<compile_context>
chip_gen: v7x
topology: tpu7x:2x2x1
jax: 0.10.0
libtpu: 0.0.40
codegen_flags: <defaults>
</compile_context>

<pallas_src>
import jax
import jax.numpy as jnp
from jax.experimental import pallas as pl
from jax.experimental.pallas import tpu as pltpu


def actor_kernel(x_ref, wc_ref, bc_ref, w2_ref, b2_ref, w3a_ref, alpha_ref, o_ref):
    H = w2_ref.shape[0]

    x = x_ref[...]                                                   # (TB, S) bf16

    # Fused l1 + embedded W3b contribution: one MXU pass, f32 accumulate.
    xc = jnp.dot(x, wc_ref[...], preferred_element_type=jnp.float32) + bc_ref[...]
    h = xc[:, :H]                                                    # l1 pre-act (f32)
    xs = xc[:, H:]                                                   # x[:,180:240]@W3b + b3

    # PReLU 1 (scalar alpha from SMEM)
    a1 = alpha_ref[0]
    h = jnp.where(h >= 0.0, h, a1 * h)

    # l2 + PReLU 2
    h2 = jnp.dot(h.astype(jnp.bfloat16), w2_ref[...],
                 preferred_element_type=jnp.float32) + b2_ref[...]
    a2 = alpha_ref[1]
    out1 = jnp.where(h2 >= 0.0, h2, a2 * h2)

    # l3: out1 @ W3a + (precomputed x-slice term incl. b3)
    logits = jnp.dot(out1.astype(jnp.bfloat16), w3a_ref[...],
                     preferred_element_type=jnp.float32) + xs

    # Softmax in f32; divide -> EUP reciprocal-multiply.
    m = jnp.max(logits, axis=-1, keepdims=True)
    e = jnp.exp(logits - m)
    inv = pl.reciprocal(jnp.sum(e, axis=-1, keepdims=True), approx=False)
    o_ref[...] = (e * inv).astype(o_ref.dtype)


def actor_forward(x, params, *, batch_tile=512):
    B, S = x.shape
    H = params["w2"].shape[0]
    A = params["w3a"].shape[1]

    TB = B if B <= batch_tile else batch_tile
    grid = (pl.cdiv(B, TB),)

    xb = x.astype(jnp.bfloat16)   # halve x DMA bytes; MXU is bf16-native

    def const(i):                 # weights/biases stay VMEM-resident across batch tiles
        return (0, 0)

    flops = 2 * B * (S * (H + A) + H * H + H * A)
    bytes_accessed = (xb.size * 2
                      + params["w_comb"].size * 2
                      + params["w2"].size * 2
                      + params["w3a"].size * 2
                      + params["b_comb"].size * 4
                      + params["b2"].size * 4
                      + params["alphas"].size * 4
                      + B * A * 4)

    return pl.pallas_call(
        actor_kernel,
        out_shape=jax.ShapeDtypeStruct((B, A), jnp.float32),
        grid=grid,
        in_specs=[
            pl.BlockSpec((TB, S), lambda i: (i, 0)),            # x, batch-tiled
            pl.BlockSpec((S, H + A), const),                    # W_comb
            pl.BlockSpec((1, H + A), const),                    # b_comb
            pl.BlockSpec((H, H), const),                        # W2
            pl.BlockSpec((1, H), const),                        # b2
            pl.BlockSpec((H, A), const),                        # W3a
            pl.BlockSpec(memory_space=pltpu.MemorySpace.SMEM),  # PReLU alphas (scalars)
        ],
        out_specs=pl.BlockSpec((TB, A), lambda i: (i, 0)),
        compiler_params=pltpu.CompilerParams(
            dimension_semantics=("parallel",)),
        cost_estimate=pl.CostEstimate(
            flops=flops, transcendentals=B * A, bytes_accessed=bytes_accessed),
    )(xb, params["w_comb"], params["b_comb"], params["w2"], params["b2"],
      params["w3a"], params["alphas"])


def init_params(key, state_dim, action_dim, n_latent_var):
    # Deterministic init mimicking PyTorch defaults:
    # Linear: U(-1/sqrt(fan_in), 1/sqrt(fan_in)); PReLU: alpha = 0.25 (scalar).
    ks = jax.random.split(key, 6)

    def lin(kw, kb, fan_in, fan_out):
        bound = 1.0 / jnp.sqrt(fan_in)
        w = jax.random.uniform(kw, (fan_in, fan_out), jnp.float32, -bound, bound)
        b = jax.random.uniform(kb, (1, fan_out), jnp.float32, -bound, bound)
        return w, b

    w1, b1 = lin(ks[0], ks[1], state_dim, n_latent_var)
    w2, b2 = lin(ks[2], ks[3], n_latent_var, n_latent_var)
    w3, b3 = lin(ks[4], ks[5], n_latent_var + 60, action_dim)

    raw = {"w1": w1, "b1": b1, "w2": w2, "b2": b2, "w3": w3, "b3": b3}

    # Fuse l3's dependence on input[:, 180:240] into the first matmul.
    w3a = w3[:n_latent_var, :]                 # applied to out1
    w3b = w3[n_latent_var:, :]                 # applied to input[:, 180:240]
    w3b_emb = jnp.zeros((state_dim, action_dim), jnp.float32).at[180:240, :].set(w3b)
    w_comb = jnp.concatenate([w1, w3b_emb], axis=1)   # (S, H + A)
    b_comb = jnp.concatenate([b1, b3], axis=1)        # (1, H + A)

    params = {
        "w_comb": w_comb.astype(jnp.bfloat16),
        "b_comb": b_comb,                       # f32
        "w2": w2.astype(jnp.bfloat16),
        "b2": b2,                               # f32
        "w3a": w3a.astype(jnp.bfloat16),
        "alphas": jnp.array([0.25, 0.25], jnp.float32),
    }
    return params, raw


def actor_reference_matched(x, raw):
    # PyTorch structure (concat + single l3 matmul) with the SAME bf16 operand
    # casts / f32 accumulation as the kernel -> tight check of the W_comb fusion.
    bf = jnp.bfloat16

    def prelu(v, a):
        return jnp.where(v >= 0, v, a * v)

    xb = x.astype(bf)
    h = prelu(jnp.dot(xb, raw["w1"].astype(bf),
                      preferred_element_type=jnp.float32) + raw["b1"], 0.25)
    out1 = prelu(jnp.dot(h.astype(bf), raw["w2"].astype(bf),
                         preferred_element_type=jnp.float32) + raw["b2"], 0.25)
    cat = jnp.concatenate([out1.astype(bf), xb[:, 180:240]], axis=1)
    logits = jnp.dot(cat, raw["w3"].astype(bf),
                     preferred_element_type=jnp.float32) + raw["b3"]
    return jax.nn.softmax(logits, axis=-1)


def actor_reference_f32(x, raw):
    # Faithful f32 PyTorch forward (semantics check, bf16-level tolerance).
    def prelu(v, a):
        return jnp.where(v >= 0, v, a * v)

    h = prelu(x @ raw["w1"] + raw["b1"], 0.25)
    out1 = prelu(h @ raw["w2"] + raw["b2"], 0.25)
    cat = jnp.concatenate([out1, x[:, 180:240]], axis=1)
    logits = cat @ raw["w3"] + raw["b3"]
    return jax.nn.softmax(logits, axis=-1)


if __name__ == "__main__":
    # Witches-like sizes kept small: state_dim must be >= 240 for the [:,180:240]
    # slice; 60 actions; small hidden width; batch of 8.
    state_dim, action_dim, n_latent_var, batch = 240, 60, 64, 8

    key = jax.random.PRNGKey(0)
    kx, kp = jax.random.split(key)
    x = jax.random.normal(kx, (batch, state_dim), jnp.float32)
    params, raw = init_params(kp, state_dim, action_dim, n_latent_var)

    out = actor_forward(x, params)
    out = jax.block_until_ready(out)

    ref_m = actor_reference_matched(x, raw)
    ref_f = actor_reference_f32(x, raw)

    assert out.shape == (batch, action_dim)
    assert jnp.allclose(out, ref_m, atol=1e-4, rtol=1e-4)   # fusion / kernel math
    assert jnp.allclose(out, ref_f, atol=5e-3, rtol=5e-3)   # bf16-operand fidelity to f32 module
    assert jnp.allclose(jnp.sum(out, axis=-1), 1.0, atol=1e-5)

    print("KERNEL_OK")
</pallas_src>

<mosaic_0001>
module attributes {stable_mosaic.version = 11 : i64} {
  func.func @actor_kernel(%arg0: i32, %arg1: memref<8x240xbf16, #tpu.memory_space<vmem>>, %arg2: memref<240x124xbf16, #tpu.memory_space<vmem>>, %arg3: memref<1x124xf32, #tpu.memory_space<vmem>>, %arg4: memref<64x64xbf16, #tpu.memory_space<vmem>>, %arg5: memref<1x64xf32, #tpu.memory_space<vmem>>, %arg6: memref<64x60xbf16, #tpu.memory_space<vmem>>, %arg7: memref<2xf32, #tpu.memory_space<smem>>, %arg8: memref<8x60xf32, #tpu.memory_space<vmem>>) attributes {dimension_semantics = [#tpu.dimension_semantics<parallel>], iteration_bounds = array<i64: 1>, scalar_prefetch = 0 : i64, scratch_operands = 0 : i64, tpu.core_type = #tpu.core_type<tc>, window_params = [{transform_indices = @transform_0, window_bounds = array<i64: 8, 240>}, {pipeline_mode = #tpu.pipeline_mode<synchronous>, transform_indices = @transform_1, window_bounds = array<i64: 240, 124>}, {pipeline_mode = #tpu.pipeline_mode<synchronous>, transform_indices = @transform_2, window_bounds = array<i64: 1, 124>}, {pipeline_mode = #tpu.pipeline_mode<synchronous>, transform_indices = @transform_3, window_bounds = array<i64: 64, 64>}, {pipeline_mode = #tpu.pipeline_mode<synchronous>, transform_indices = @transform_4, window_bounds = array<i64: 1, 64>}, {pipeline_mode = #tpu.pipeline_mode<synchronous>, transform_indices = @transform_5, window_bounds = array<i64: 64, 60>}, {transform_indices = @transform_6, window_bounds = array<i64: 2>}, {transform_indices = @transform_7, window_bounds = array<i64: 8, 60>}]} {
    %c0 = arith.constant 0 : index
    %c0_0 = arith.constant 0 : index
    %0 = vector.load %arg1[%c0, %c0_0] : memref<8x240xbf16, #tpu.memory_space<vmem>>, vector<8x240xbf16>
    %c0_1 = arith.constant 0 : index
    %c0_2 = arith.constant 0 : index
    %1 = vector.load %arg2[%c0_1, %c0_2] : memref<240x124xbf16, #tpu.memory_space<vmem>>, vector<240x124xbf16>
    %cst = arith.constant dense<0.000000e+00> : vector<8x124xf32>
    %2 = tpu.matmul %0, %1, %cst {dimension_numbers = #tpu.dot_dimension_numbers<[1], [0], [0], [1], [0, 0, 1, 1], [], []>} : vector<8x240xbf16>, vector<240x124xbf16>, vector<8x124xf32> -> vector<8x124xf32>
    %c0_3 = arith.constant 0 : index
    %c0_4 = arith.constant 0 : index
    %3 = vector.load %arg3[%c0_3, %c0_4] : memref<1x124xf32, #tpu.memory_space<vmem>>, vector<1x124xf32>
    %4 = vector.broadcast %3 : vector<1x124xf32> to vector<8x124xf32>
    %5 = arith.addf %2, %4 : vector<8x124xf32>
    %6 = vector.extract_strided_slice %5 {offsets = [0, 0], sizes = [8, 64], strides = [1, 1]} : vector<8x124xf32> to vector<8x64xf32>
    %7 = vector.extract_strided_slice %5 {offsets = [0, 64], sizes = [8, 60], strides = [1, 1]} : vector<8x124xf32> to vector<8x60xf32>
    %c0_5 = arith.constant 0 : index
    %8 = memref.load %arg7[%c0_5] : memref<2xf32, #tpu.memory_space<smem>>
    %cst_6 = arith.constant 0.000000e+00 : f32
    %9 = vector.broadcast %cst_6 : f32 to vector<8x64xf32>
    %10 = arith.cmpf oge, %6, %9 : vector<8x64xf32>
    %11 = vector.broadcast %8 : f32 to vector<8x64xf32>
    %12 = arith.mulf %11, %6 : vector<8x64xf32>
    %13 = arith.select %10, %6, %12 : vector<8x64xi1>, vector<8x64xf32>
    %14 = arith.truncf %13 : vector<8x64xf32> to vector<8x64xbf16>
    %c0_7 = arith.constant 0 : index
    %c0_8 = arith.constant 0 : index
    %15 = vector.load %arg4[%c0_7, %c0_8] : memref<64x64xbf16, #tpu.memory_space<vmem>>, vector<64x64xbf16>
    %cst_9 = arith.constant dense<0.000000e+00> : vector<8x64xf32>
    %16 = tpu.matmul %14, %15, %cst_9 {dimension_numbers = #tpu.dot_dimension_numbers<[1], [0], [0], [1], [0, 0, 1, 1], [], []>} : vector<8x64xbf16>, vector<64x64xbf16>, vector<8x64xf32> -> vector<8x64xf32>
    %c0_10 = arith.constant 0 : index
    %c0_11 = arith.constant 0 : index
    %17 = vector.load %arg5[%c0_10, %c0_11] : memref<1x64xf32, #tpu.memory_space<vmem>>, vector<1x64xf32>
    %18 = vector.broadcast %17 : vector<1x64xf32> to vector<8x64xf32>
    %19 = arith.addf %16, %18 : vector<8x64xf32>
    %c1 = arith.constant 1 : index
    %20 = memref.load %arg7[%c1] : memref<2xf32, #tpu.memory_space<smem>>
    %cst_12 = arith.constant 0.000000e+00 : f32
    %21 = vector.broadcast %cst_12 : f32 to vector<8x64xf32>
    %22 = arith.cmpf oge, %19, %21 : vector<8x64xf32>
    %23 = vector.broadcast %20 : f32 to vector<8x64xf32>
    %24 = arith.mulf %23, %19 : vector<8x64xf32>
    %25 = arith.select %22, %19, %24 : vector<8x64xi1>, vector<8x64xf32>
    %26 = arith.truncf %25 : vector<8x64xf32> to vector<8x64xbf16>
    %c0_13 = arith.constant 0 : index
    %c0_14 = arith.constant 0 : index
    %27 = vector.load %arg6[%c0_13, %c0_14] : memref<64x60xbf16, #tpu.memory_space<vmem>>, vector<64x60xbf16>
    %cst_15 = arith.constant dense<0.000000e+00> : vector<8x60xf32>
    %28 = tpu.matmul %26, %27, %cst_15 {dimension_numbers = #tpu.dot_dimension_numbers<[1], [0], [0], [1], [0, 0, 1, 1], [], []>} : vector<8x64xbf16>, vector<64x60xbf16>, vector<8x60xf32> -> vector<8x60xf32>
    %29 = arith.addf %28, %7 : vector<8x60xf32>
    %cst_16 = arith.constant dense<0xFF800000> : vector<8xf32>
    %30 = vector.multi_reduction <maximumf>, %29, %cst_16 [1] : vector<8x60xf32> to vector<8xf32>
    %31 = vector.shape_cast %30 : vector<8xf32> to vector<8x1xf32>
    %32 = vector.broadcast %31 : vector<8x1xf32> to vector<8x60xf32>
    %33 = arith.subf %29, %32 : vector<8x60xf32>
    %34 = math.exp %33 : vector<8x60xf32>
    %cst_17 = arith.constant dense<0.000000e+00> : vector<8xf32>
    %35 = vector.multi_reduction <add>, %34, %cst_17 [1] : vector<8x60xf32> to vector<8xf32>
    %36 = vector.shape_cast %35 : vector<8xf32> to vector<8x1xf32>
    %37 = tpu.reciprocal %36 : vector<8x1xf32> -> vector<8x1xf32>
    %38 = vector.broadcast %37 : vector<8x1xf32> to vector<8x60xf32>
    %39 = arith.mulf %34, %38 : vector<8x60xf32>
    %c0_18 = arith.constant 0 : index
    %c0_19 = arith.constant 0 : index
    %40 = vector.load %arg8[%c0_18, %c0_19] : memref<8x60xf32, #tpu.memory_space<vmem>>, vector<8x60xf32>
    tpu.vector_store %arg8[%c0_18, %c0_19], %39 {strides = array<i32>} : memref<8x60xf32, #tpu.memory_space<vmem>>, vector<8x60xf32>,
    return
  }
  func.func @transform_0(%arg0: i32) -> (i32, i32) {
    %c0_i32 = arith.constant 0 : i32
    %c0_i32_0 = arith.constant 0 : i32
    return %arg0, %c0_i32 : i32, i32
  }
  func.func @transform_1(%arg0: i32) -> (i32, i32) {
    %c0_i32 = arith.constant 0 : i32
    %c0_i32_0 = arith.constant 0 : i32
    %c0_i32_1 = arith.constant 0 : i32
    return %c0_i32, %c0_i32_0 : i32, i32
  }
  func.func @transform_2(%arg0: i32) -> (i32, i32) {
    %c0_i32 = arith.constant 0 : i32
    %c0_i32_0 = arith.constant 0 : i32
    %c0_i32_1 = arith.constant 0 : i32
    return %c0_i32, %c0_i32_0 : i32, i32
  }
  func.func @transform_3(%arg0: i32) -> (i32, i32) {
    %c0_i32 = arith.constant 0 : i32
    %c0_i32_0 = arith.constant 0 : i32
    %c0_i32_1 = arith.constant 0 : i32
    return %c0_i32, %c0_i32_0 : i32, i32
  }
  func.func @transform_4(%arg0: i32) -> (i32, i32) {
    %c0_i32 = arith.constant 0 : i32
    %c0_i32_0 = arith.constant 0 : i32
    %c0_i32_1 = arith.constant 0 : i32
    return %c0_i32, %c0_i32_0 : i32, i32
  }
  func.func @transform_5(%arg0: i32) -> (i32, i32) {
    %c0_i32 = arith.constant 0 : i32
    %c0_i32_0 = arith.constant 0 : i32
    %c0_i32_1 = arith.constant 0 : i32
    return %c0_i32, %c0_i32_0 : i32, i32
  }
  func.func @transform_6(%arg0: i32) -> i32 {
    %c0_i32 = arith.constant 0 : i32
    %c0_i32_0 = arith.constant 0 : i32
    return %c0_i32 : i32
  }
  func.func @transform_7(%arg0: i32) -> (i32, i32) {
    %c0_i32 = arith.constant 0 : i32
    %c0_i32_0 = arith.constant 0 : i32
    return %arg0, %c0_i32 : i32, i32
  }
}

</mosaic_0001>

<bundles_post_ra>
// kernel: tpu_custom_call.1
= control target key start
LH: loop header
LB: loop body
LE: loop exit
PB: predicated region body
PF: predicated region fallthrough
CT: control target
= control target key end

     0   :  { %12 = vsyncpa [#allocation3], 0  ;;  %s861_s0 = inlined_call_operand.hbm [shape: bf16[8,240], index: 0, kind: input, shape index: {}]   ;;  %s862_s1 = inlined_call_operand.hbm [shape: bf16[240,124], index: 1, kind: input, shape index: {}]   ;;  %s863_s2 = inlined_call_operand.vmem [shape: f32[1,124], index: 2, kind: input, shape index: {}]   ;;  %s864_s3 = inlined_call_operand.hbm [shape: bf16[64,64], index: 3, kind: input, shape index: {}]   ;;  %s865_s4 = inlined_call_operand.vmem [shape: f32[1,64], index: 4, kind: input, shape index: {}]   ;;  %s866_s5 = inlined_call_operand.hbm [shape: bf16[64,60], index: 5, kind: input, shape index: {}]   ;;  %s867_s6 = inlined_call_operand.vmem [shape: f32[2], index: 6, kind: input, shape index: {}]   ;;  %s868_s7 = inlined_call_operand.hbm [shape: f32[8,60], index: 7, kind: output, shape index: {}]  }
   0x1   :  { %13 = vsyncpa [#allocation7], 0 }
   0x2   :  { %14 = vsyncpa [#allocation10], 0 }
   0x3   :  { %15 = vsyncpa [#allocation5], 0 }
   0x4   :  { %16 = vsyncpa [#allocation4], 0  ;;  %s714_s24 = smov [#allocation6]   ;;  %s582_s28 = scalar_lea.hbm %s862_s1, 1920 }
   0x5   :  { %s32_s25 = sshll.u32 %s714_s24, 4  ;;  %p583_p0 = scmp.ne.s32.totalorder %s862_s1, %s582_s28  ;;  %s33_s25 = int_to_ptr.vmem [resolvable:$true] %s32_s25 }
   0x6   :  { %p586_p1 = scmp.lt.u32.totalorder %s582_s28, %s862_s1 }
   0x8   :  { %p588_p2 = pnand %p586_p1, %p583_p0 }
   0xa   :  { %591 = shalt.err (!%p588_p2)
}
   0xb   :  { %s592_s10 = scalar_lea.vmem %s33_s25, 1920  ;;  %p597_p4 = scmp.lt.s32.totalorder %s33_s25, %s33_s25 }
   0xc   :  { %p593_p3 = scmp.ne.s32.totalorder %s33_s25, %s592_s10  ;;  %p598_p5 = scmp.lt.s32.totalorder %s592_s10, %s592_s10 }
   0xe   :  { %p599_p6 = por %p598_p5, %p597_p4 }
  0x10   :  { %p600_p7 = pnand %p599_p6, %p593_p3 }
  0x12   :  { %603 = shalt.err (!%p600_p7)
}
  0x13   :  { %s715_s11 = smov 64   ;;  %s716_s12 = smov 4  }
  0x14   :  { %38 = dma.hbm_to_vmem [thread:$0]  %s862_s1, 1920, %s33_s25, [#allocation7], %s715_s11, %s715_s11, %s716_s12  }
  0x15   :  { %s717_s15 = smov [#allocation2]   ;;  %s718_s17 = smov [#allocation8]  }
  0x16   :  { %s23_s16 = sshll.u32 %s717_s15, 4  ;;  %s46_s18 = sshll.u32 %s718_s17, 4  ;;  %s24_s16 = int_to_ptr.vmem [resolvable:$true] %s23_s16  ;;  %s47_s18 = int_to_ptr.vmem [resolvable:$true] %s46_s18 }
  0x17   :  { %s604_s21 = scalar_lea.hbm %s861_s0, 128 }
  0x18   :  { %p605_p8 = scmp.ne.s32.totalorder %s861_s0, %s604_s21  ;;  %p608_p9 = scmp.lt.u32.totalorder %s604_s21, %s861_s0 }
  0x1a   :  { %p610_p10 = pnand %p608_p9, %p605_p8 }
  0x1c   :  { %613 = shalt.err (!%p610_p10)
}
  0x1d   :  { %s614_s1 = scalar_lea.vmem %s24_s16, 128  ;;  %p619_p12 = scmp.lt.s32.totalorder %s24_s16, %s24_s16 }
  0x1e   :  { %p615_p11 = scmp.ne.s32.totalorder %s24_s16, %s614_s1  ;;  %p620_p13 = scmp.lt.s32.totalorder %s614_s1, %s614_s1 }
  0x20   :  { %p621_p0 = por %p620_p13, %p619_p12 }
  0x22   :  { %p622_p1 = pnand %p621_p0, %p615_p11 }
  0x24   :  { %625 = shalt.err (!%p622_p1)
}
  0x25   :  { %26 = dma.hbm_to_vmem [thread:$0]  %s861_s0, 128, %s24_s16, [#allocation3]  }
  0x26   :  { %s626_s30 = scalar_lea.hbm %s864_s3, 512 }
  0x27   :  { %p627_p2 = scmp.ne.s32.totalorder %s864_s3, %s626_s30  ;;  %p630_p3 = scmp.lt.u32.totalorder %s626_s30, %s864_s3 }
  0x29   :  { %p632_p4 = pnand %p630_p3, %p627_p2 }
  0x2b   :  { %635 = shalt.err (!%p632_p4)
}
  0x2c   :  { %s636_s14 = scalar_lea.vmem %s47_s18, 512  ;;  %p641_p6 = scmp.lt.s32.totalorder %s47_s18, %s47_s18 }
  0x2d   :  { %p637_p5 = scmp.ne.s32.totalorder %s47_s18, %s636_s14  ;;  %p642_p7 = scmp.lt.s32.totalorder %s636_s14, %s636_s14 }
  0x2f   :  { %p643_p8 = por %p642_p7, %p641_p6 }
  0x31   :  { %p644_p9 = pnand %p643_p8, %p637_p5 }
  0x33   :  { %647 = shalt.err (!%p644_p9)
}
  0x34   :  { %52 = dma.hbm_to_vmem [thread:$0]  %s864_s3, 512, %s47_s18, [#allocation7], %s715_s11, %s715_s11, %s716_s12  }
  0x35   :  { %s719_s16 = smov [#allocation9]   ;;  %s73_s21 = sshll.u32 %s867_s6, 4  ;;  %s74_s21 = int_to_ptr.vmem [resolvable:$true] %s73_s21 }
  0x36   :  { %s60_s17 = sshll.u32 %s719_s16, 4  ;;  %s648_s24 = scalar_lea.hbm %s866_s5, 512  ;;  %s61_s17 = int_to_ptr.vmem [resolvable:$true] %s60_s17 }
  0x37   :  { %p649_p10 = scmp.ne.s32.totalorder %s866_s5, %s648_s24  ;;  %p652_p11 = scmp.lt.u32.totalorder %s648_s24, %s866_s5 }
  0x39   :  { %p654_p12 = pnand %p652_p11, %p649_p10 }
  0x3b   :  { %657 = shalt.err (!%p654_p12)
}
  0x3c   :  { %s658_s3 = scalar_lea.vmem %s61_s17, 512  ;;  %p663_p0 = scmp.lt.s32.totalorder %s61_s17, %s61_s17 }
  0x3d   :  { %p659_p13 = scmp.ne.s32.totalorder %s61_s17, %s658_s3  ;;  %p664_p1 = scmp.lt.s32.totalorder %s658_s3, %s658_s3 }
  0x3f   :  { %p665_p2 = por %p664_p1, %p663_p0 }
  0x41   :  { %p666_p3 = pnand %p665_p2, %p659_p13 }
  0x43   :  { %669 = shalt.err (!%p666_p3)
}
  0x44   :  { %66 = dma.hbm_to_vmem [thread:$0]  %s866_s5, 512, %s61_s17, [#allocation10], %s715_s11, %s715_s11, %s716_s12  }
  0x45   :  { %s670_s28 = scalar_lea.vmem %s74_s21, 16  ;;  %p675_p5 = scmp.lt.s32.totalorder %s74_s21, %s74_s21 }
  0x46   :  { %p671_p4 = scmp.ne.s32.totalorder %s74_s21, %s670_s28  ;;  %p676_p6 = scmp.lt.s32.totalorder %s670_s28, %s670_s28 }
  0x48   :  { %p677_p7 = por %p676_p6, %p675_p5 }
  0x4a   :  { %p678_p8 = pnand %p677_p7, %p671_p4 }
  0x4c   :  { %681 = shalt.err (!%p678_p8)
}
  0x4d   :  { %s720_s29 = smov [#allocation11]  }
  0x4e   :  { %76 = dma.vmem_to_smem %s74_s21, 16, %s720_s29, [#allocation5]  }
  0x4f   :  { %704 = dma.done.wait [#allocation3], 128  }
  0x50   :  { %705 = vsyncadd [#allocation3], 4294967168 }
  0x51   :  { %706 = dma.done.wait [#allocation7], 2432  }
  0x52   :  { %707 = vsyncadd [#allocation7], 4294964864 }
  0x53   :  { %708 = dma.done.wait [#allocation10], 512  }
  0x54   :  { %709 = vsyncadd [#allocation10], 4294966784 }
  0x55   :  { %710 = dma.done.wait [#allocation5], 16  }
  0x56   :  { %711 = vsyncadd [#allocation5], 4294967280 }
  0x57   :  { %92 = sfence }
  0x58   :  { %v553_v0 = vld [vmem:[#allocation6] sm:$0xff]   ;;  %v721_v1 = vmov 0   ;;  %v554_v2 = vld [vmem:[#allocation6 + $0x8] sm:$0xff]   ;;  %v722_v3 = vmov 0.0   ;;  %v555_v4 = vld [vmem:[#allocation6 + $0x10] sm:$0xff]   ;;  %vm228_vm0 = vcmask 916480  }
  0x59   :  { %232 = vmatprep.subr.bf16.mxu0 %v721_v1  ;;  %518 = vmatprep.subr.bf16.mxu1 %v722_v3  ;;  %v556_v5 = vld [vmem:[#allocation6 + $0x18] sm:$0xff]   ;;  %v557_v6 = vld [vmem:[#allocation6 + $0x20] sm:$0xff]   ;;  %v558_v10 = vld [vmem:[#allocation6 + $0x28] sm:$0xff]   ;;  %vm723_vm1 = vmmov 0   ;;  %s272_s5 = sld [smem:[#allocation11]]  ;;  %vm317_vm3 = vcmask 523264  }
  0x5a   :  { %233 = vmatpush1.bf16.msra.mxu0 %v553_v0  ;;  %v94_v7 = vld [vmem:[#allocation2] sm:$0xff]  ;;  %v571_v11 = vld [vmem:[#allocation8 + $0x8] sm:$0xff]   ;;  %v559_v12 = vld [vmem:[#allocation6 + $0x30] sm:$0xff]   ;;  %526 = vmatprep.mubr.msk.bf16.mxu1 %vm723_vm1, %v722_v3  ;;  %vm446_vm5 = vcmask 490496  }
  0x5b   :  { %234 = vmatprep.subr.bf16.mxu0 %v721_v1  ;;  %v479_v8 = vcombine.high %v94_v7, %v94_v7  ;;  %v570_v9 = vld [vmem:[#allocation8] sm:$0xff]   ;;  %v561_v14 = vld [vmem:[#allocation6 + $0x40] sm:$0xff]   ;;  %v562_v15 = vld [vmem:[#allocation6 + $0x48] sm:$0xff]   ;;  %v478_v21 = vcombine.low %v94_v7, %v94_v7 }
  0x5c   :  { %519 = vmatpush3.bf16.msra.mxu1 %v570_v9  ;;  %v560_v13 = vld [vmem:[#allocation6 + $0x38] sm:$0xff]   ;;  %v563_v16 = vld [vmem:[#allocation6 + $0x50] sm:$0xff]   ;;  %v565_v18 = vld [vmem:[#allocation6 + $0x60] sm:$0xff]  }
  0x5d   :  { %495 = vmatprep.mubr.msk.bf16.mxu0 %vm228_vm0, %v479_v8  ;;  %520 = vmatprep.subr.bf16.mxu1 %v722_v3  ;;  %v564_v17 = vld [vmem:[#allocation6 + $0x58] sm:$0xff]   ;;  %v566_v19 = vld [vmem:[#allocation6 + $0x68] sm:$0xff]   ;;  %v567_v20 = vld [vmem:[#allocation6 + $0x70] sm:$0xff]  }
  0x5e   :  { %235 = vmatpush1.bf16.msra.mxu0 %v554_v2  ;;  %v572_v22 = vld [vmem:[#allocation8 + $0x10] sm:$0xff]   ;;  %v573_v23 = vld [vmem:[#allocation8 + $0x18] sm:$0xff]   ;;  %v477_v24 = vld [vmem:[%s863_s2] ss:$0 sm:$0xff]  ;;  %s502_s2 = sld [smem:[#allocation11 + $0x1]] }
  0x5f   :  { %236 = vmatprep.subr.bf16.mxu0 %v721_v1  ;;  %v274_v26 = vstv %s272_s5  ;;  %v574_v33 = vld [vmem:[#allocation9] sm:$0xff]   ;;  %v575_v35 = vld [vmem:[#allocation9 + $0x8] sm:$0xff]   ;;  %v576_v36 = vld [vmem:[#allocation9 + $0x10] sm:$0xff]  }
  0x60   :  { %521 = vmatpush3.bf16.msra.mxu1 %v571_v11  ;;  %v577_v37 = vld [vmem:[#allocation9 + $0x18] sm:$0xff]   ;;  %v496_v38 = vld [vmem:[%s865_s4] ss:$0 sm:$0xff]  ;;  %s724_s4 = smov [#allocation12]  }
  0x61   :  { %522 = vmatprep.subr.bf16.mxu1 %v722_v3  ;;  %s465_s9 = sshll.u32 %s724_s4, 4  ;;  %s466_s9 = int_to_ptr.vmem [resolvable:$true] %s465_s9 }
  0x62   :  { %237 = vmatpush1.bf16.msra.mxu0 %v555_v4  ;;  %s682_s10 = scalar_lea.vmem %s466_s9, 128  ;;  %p687_p10 = scmp.lt.s32.totalorder %s466_s9, %s466_s9 }
  0x63   :  { %238 = vmatprep.subr.bf16.mxu0 %v721_v1  ;;  %p683_p9 = scmp.ne.s32.totalorder %s466_s9, %s682_s10  ;;  %p688_p11 = scmp.lt.s32.totalorder %s682_s10, %s682_s10 }
  0x64   :  { %523 = vmatpush3.bf16.msra.mxu1 %v572_v22  ;;  %v363_v40 = vstv %s502_s2 }
  0x65   :  { %524 = vmatprep.subr.bf16.mxu1 %v722_v3  ;;  %p689_p12 = por %p688_p11, %p687_p10 }
  0x66   :  { %239 = vmatpush1.bf16.msra.mxu0 %v556_v5 }
  0x67   :  { %240 = vmatprep.subr.bf16.mxu0 %v721_v1  ;;  %p690_p13 = pnand %p689_p12, %p683_p9 }
  0x68   :  { %525 = vmatpush3.bf16.msra.mxu1 %v573_v23 }
  0x69   :  { %530 = vmatprep.subr.bf16.mxu1 %v722_v3 }
  0x6a   :  { %241 = vmatpush1.bf16.msra.mxu0 %v557_v6 }
  0x6b   :  { %242 = vmatprep.subr.bf16.mxu0 %v721_v1 }
  0x6e   :  { %243 = vmatpush1.bf16.msra.mxu0 %v558_v10 }
  0x6f   :  { %244 = vmatprep.subr.bf16.mxu0 %v721_v1 }
  0x72   :  { %245 = vmatpush1.bf16.msra.mxu0 %v559_v12 }
  0x73   :  { %246 = vmatprep.subr.bf16.mxu0 %v721_v1 }
  0x76   :  { %247 = vmatpush1.bf16.msra.mxu0 %v560_v13 }
  0x77   :  { %248 = vmatprep.subr.bf16.mxu0 %v721_v1 }
  0x7a   :  { %249 = vmatpush1.bf16.msra.mxu0 %v561_v14 }
  0x7b   :  { %250 = vmatprep.subr.bf16.mxu0 %v721_v1 }
  0x7e   :  { %251 = vmatpush1.bf16.msra.mxu0 %v562_v15 }
  0x7f   :  { %252 = vmatprep.subr.bf16.mxu0 %v721_v1 }
  0x82   :  { %253 = vmatpush1.bf16.msra.mxu0 %v563_v16 }
  0x83   :  { %254 = vmatprep.subr.bf16.mxu0 %v721_v1 }
  0x86   :  { %255 = vmatpush1.bf16.msra.mxu0 %v564_v17 }
  0x87   :  { %256 = vmatprep.subr.bf16.mxu0 %v721_v1 }
  0x8a   :  { %257 = vmatpush1.bf16.msra.mxu0 %v565_v18 }
  0x8b   :  { %258 = vmatprep.subr.bf16.mxu0 %v721_v1 }
  0x8e   :  { %259 = vmatpush1.bf16.msra.mxu0 %v566_v19 }
  0x8f   :  { %260 = vmatprep.subr.bf16.mxu0 %v721_v1 }
  0x92   :  { %261 = vmatpush1.bf16.msra.mxu0 %v567_v20 }
  0x95   :  { %265 = vmatmul.mubr.bf16.vlgmr.msra.gmra.mrb[0].mxu0 %v478_v21 }
 0x168   :  { %v266_v25 = vpop.f32.mrb[0].mxu0 }
 0x169   :  { %v267_v27 = vadd.f32 %v477_v24, %v266_v25  ;;  %v268_v28 = vpop.f32.mrb[1].mxu0 }
 0x16a   :  { %v269_v29 = vpop.f32.mrb[2].mxu0 }
 0x16b   :  { %vm273_vm2 = vcmp.ge.f32.partialorder %v267_v27, 0.0  ;;  %v275_v30 = vmul.f32 %v274_v26, %v267_v27  ;;  %v270_v31 = vpop.f32.mrb[3].mxu0  ;;  %400 = vrot.lane.b32.xlu0 %v267_v27, %s715_s11 }
 0x16d   :  { %v276_v32 = vsel %vm273_vm2, %v267_v27, %v275_v30 }
 0x16e   :  { %v277_v34 = vpack.c.bf16 %v276_v32, %v276_v32 }
 0x170   :  { %527 = vmatmul.mubr.msk.bf16.vlgmr.msra.gmra.mrb[0].mxu1 %vm317_vm3, %v277_v34 }
 0x171   :  { %531 = vmatpush3.bf16.msra.mxu1 %v574_v33  ;;  %538 = vmatprep.mubr.msk.bf16.mxu1 %vm723_vm1, %v722_v3 }
 0x172   :  { %532 = vmatprep.subr.bf16.mxu1 %v722_v3 }
 0x175   :  { %533 = vmatpush3.bf16.msra.mxu1 %v575_v35 }
 0x176   :  { %534 = vmatprep.subr.bf16.mxu1 %v722_v3 }
 0x179   :  { %535 = vmatpush3.bf16.msra.mxu1 %v576_v36 }
 0x17a   :  { %536 = vmatprep.subr.bf16.mxu1 %v722_v3 }
 0x17d   :  { %537 = vmatpush3.bf16.msra.mxu1 %v577_v37 }
 0x1dd   :  { %v401_v48 = vpop.permute.xlu0 %400 }
 0x243   :  { %v355_v39 = vpop.f32.mrb[0].mxu1 }
 0x244   :  { %v356_v41 = vadd.f32 %v496_v38, %v355_v39  ;;  %v528_v42 = vpop.f32.mrb[1].mxu1 }
 0x245   :  { %v358_v43 = vpop.f32.mrb[2].mxu1 }
 0x246   :  { %vm362_vm4 = vcmp.ge.f32.partialorder %v356_v41, 0.0  ;;  %v364_v44 = vmul.f32 %v363_v40, %v356_v41  ;;  %v529_v45 = vpop.f32.mrb[3].mxu1 }
 0x248   :  { %v365_v46 = vsel %vm362_vm4, %v356_v41, %v364_v44 }
 0x249   :  { %v366_v47 = vpack.c.bf16 %v365_v46, %v365_v46 }
 0x24b   :  { %539 = vmatmul.mubr.msk.bf16.vlgmr.msra.gmra.mrb[4].mxu1 %vm317_vm3, %v366_v47 }
 0x31e   :  { %v440_v49 = vpop.f32.mrb[4].mxu1 }
 0x31f   :  { %v441_v50 = vadd.f32 %v440_v49, %v401_v48  ;;  %v540_v51 = vpop.f32.mrb[5].mxu1 }
 0x320   :  { %v443_v52 = vpop.f32.mrb[6].mxu1 }
 0x321   :  { %v541_v53 = vpop.f32.mrb[7].mxu1  ;;  %v447_v54 = vsel %vm446_vm5, %v441_v50, -inf }
 0x322   :  { %448 = vmax.xlane.f32.xlu0 %v447_v54 }
 0x3af   :  { %v449_v55 = vpop.xlane.xlu0 %448 }
 0x3b0   :  { %v450_v56 = vsub.f32 %v441_v50, %v449_v55 }
 0x3b2   :  { %v451_v57 = vmul.f32 1.442695, %v450_v56 }
 0x3b4   :  { %578 = vpow2.f32 %v451_v57 }
 0x3be   :  { %v579_v58 = vpop.eup %578 }
 0x3bf   :  { %v453_v59 = vsel %vm446_vm5, %v579_v58, 0.0 }
 0x3c0   :  { %454 = vadd.xlane.f32.xlu1 %v453_v59 }
 0x44d   :  { %v455_v60 = vpop.xlane.xlu1 %454 }
 0x44e   :  { %580 = vrcp.f32 %v455_v60 }
 0x458   :  { %v581_v61 = vpop.eup %580 }
 0x459   :  { %v457_v62 = vmul.f32 %v581_v61, %v579_v58 }
 0x45b   :  { %458 = vst.msk [vmem:[#allocation12] sm:$0xff] %vm446_vm5, %v457_v62 }
 0x45c   :  { %693 = shalt.err (!%p690_p13)
}
 0x45d   :  { %s694_s0 = scalar_lea.hbm %s868_s7, 128 }
 0x45e   :  { %p695_p0 = scmp.ne.s32.totalorder %s868_s7, %s694_s0  ;;  %p698_p1 = scmp.lt.u32.totalorder %s694_s0, %s868_s7 }
 0x460   :  { %p700_p2 = pnand %p698_p1, %p695_p0 }
 0x462   :  { %703 = shalt.err (!%p700_p2)
}
 0x463   :  { %468 = dma.vmem_to_hbm [thread:$0]  %s466_s9, 128, %s868_s7, [#allocation4]  }
 0x464   :  { %712 = dma.done.wait [#allocation4], 128  }
 0x465   :  { %713 = vsyncadd [#allocation4], 4294967168 }
 0x466   :  { %472 = vsyncpa [#allocation3], 1 }
 0x467   :  { %473 = vsyncpa [#allocation7], 1 }
 0x468   :  { %474 = vsyncpa [#allocation10], 1 }
 0x469   :  { %475 = vsyncpa [#allocation4], 1 }
 0x46a   :  { %476 = vsyncpa [#allocation5], 1 }

</bundles_post_ra>
